<compile_context>
chip_gen: v6e
topology: v6e:2x2x1
jax: 0.10.0
libtpu: 0.0.40
codegen_flags: <defaults>
</compile_context>

<pallas_src>
import jax
import jax.numpy as jnp
from jax.experimental import pallas as pl
from jax.experimental.pallas import tpu as pltpu

LOG_STD_MIN = -20.0
LOG_STD_MAX = 2.0
LANE = 128
SUBLANE = 8
MAX_BATCH_TILE = 2048  # (2048,128) f32 slab double-buffered ~= 2 MiB: fine even on v7x (64 MiB VMEM)


def _round_up(x, m):
    return ((x + m - 1) // m) * m


def _actor_kernel(x_ref, w1_ref, b1_ref, w2_ref, b2_ref, wh_ref, bh_ref,
                  lo_ref, hi_ref, out_ref):
    """Fused MLP forward: 2x (Linear+ReLU), fused mean/log_std head, per-column clamp.

    Weights arrive in bf16; activations are cast to bf16 right before each MXU dot;
    accumulation, bias-add, ReLU and clamp all run in f32.
    """
    x = x_ref[...].astype(jnp.bfloat16)

    # shared_net layer 1: Linear + ReLU
    h = jnp.dot(x, w1_ref[...], preferred_element_type=jnp.float32) + b1_ref[...]
    h = jnp.maximum(h, 0.0)

    # shared_net layer 2: Linear + ReLU
    h = jnp.dot(h.astype(jnp.bfloat16), w2_ref[...],
                preferred_element_type=jnp.float32) + b2_ref[...]
    h = jnp.maximum(h, 0.0)

    # Fused heads: one wide (hidden -> padded 2*action_dim) matmul.
    head = jnp.dot(h.astype(jnp.bfloat16), wh_ref[...],
                   preferred_element_type=jnp.float32) + bh_ref[...]

    # Per-column clamp: lo/hi are (-inf, +inf) on mean / padded columns (no-op there)
    # and (LOG_STD_MIN, LOG_STD_MAX) on the log_std columns.
    head = jnp.minimum(jnp.maximum(head, lo_ref[...]), hi_ref[...])

    # Single lane-dense (padded-to-128) output write.
    out_ref[...] = head.astype(out_ref.dtype)


def _choose_batch_tiling(B):
    """Returns (padded_B, batch_tile, steps).

    - B <= MAX_BATCH_TILE: one grid step covering the whole (8-padded) batch.
      Single-TC chips (v5e/v6e) gain nothing from extra steps, and one big M tile
      fills the MXU far better.
    - Larger B: tile at MAX_BATCH_TILE and force an even step count so a
      'parallel'-sharded grid splits evenly across v7x's two TensorCores.
    """
    b_pad = _round_up(B, SUBLANE)
    if b_pad <= MAX_BATCH_TILE:
        return b_pad, b_pad, 1
    tile = MAX_BATCH_TILE
    steps = pl.cdiv(b_pad, tile)
    if steps % 2 == 1:
        steps += 1
    return steps * tile, tile, steps


def actor_forward(state, params, *, log_std_min=LOG_STD_MIN, log_std_max=LOG_STD_MAX,
                  return_padded_slab=False):
    """Runs the fused Actor forward pass as a Pallas TPU kernel.

    state:  (B, state_dim) float32
    params: dict with (in, out)-shaped f32 weights and (1, out)-shaped f32 biases
            (w1, b1, w2, b2, wm, bm, ws, bs).

    Returns (mean, log_std), each (B, action_dim) float32.
    With return_padded_slab=True, returns (slab, action_dim) where slab is the
    (padded_B, head_pad) lane-dense output; a fused consumer can index mean /
    log_std out of it directly and avoid an extra HBM round-trip.
    """
    B, state_dim = state.shape
    hidden_dim = params["w1"].shape[1]
    action_dim = params["wm"].shape[1]
    two_a = 2 * action_dim
    head_pad = max(LANE, _round_up(two_a, LANE))

    b_pad, batch_tile, steps = _choose_batch_tiling(B)
    if b_pad != B:
        state = jnp.pad(state, ((0, b_pad - B), (0, 0)))

    # --- Weight preparation ---------------------------------------------------
    # bf16 weights (native MXU throughput, half the DMA/VMEM bytes); biases stay f32.
    w1 = params["w1"].astype(jnp.bfloat16)
    w2 = params["w2"].astype(jnp.bfloat16)
    b1 = params["b1"].astype(jnp.float32)
    b2 = params["b2"].astype(jnp.float32)

    w_head = jnp.concatenate([params["wm"], params["ws"]], axis=1)   # (H, 2A)
    b_head = jnp.concatenate([params["bm"], params["bs"]], axis=1)   # (1, 2A)
    if head_pad != two_a:
        w_head = jnp.pad(w_head, ((0, 0), (0, head_pad - two_a)))
        b_head = jnp.pad(b_head, ((0, 0), (0, head_pad - two_a)))
    w_head = w_head.astype(jnp.bfloat16)
    b_head = b_head.astype(jnp.float32)

    # Per-column clamp bounds: only the log_std columns get finite bounds.
    col = jnp.arange(head_pad)
    is_log_std = (col >= action_dim) & (col < two_a)
    lo = jnp.where(is_log_std, log_std_min, -jnp.inf).astype(jnp.float32)[None, :]
    hi = jnp.where(is_log_std, log_std_max, jnp.inf).astype(jnp.float32)[None, :]

    # --- BlockSpecs -------------------------------------------------------------
    def rep(arr):  # replicated / resident across grid steps
        return pl.BlockSpec(arr.shape, lambda i: (0, 0))

    in_specs = [
        pl.BlockSpec((batch_tile, state_dim), lambda i: (i, 0)),   # state tile
        rep(w1), rep(b1),
        rep(w2), rep(b2),
        rep(w_head), rep(b_head),
        rep(lo), rep(hi),
    ]
    out_specs = pl.BlockSpec((batch_tile, head_pad), lambda i: (i, 0))
    out_shape = jax.ShapeDtypeStruct((b_pad, head_pad), jnp.float32)

    # Advisory cost so XLA can overlap this small custom call with surrounding ops.
    flops = 2 * b_pad * (state_dim * hidden_dim + hidden_dim * hidden_dim
                         + hidden_dim * head_pad)
    bytes_accessed = (b_pad * state_dim * 4                       # state (f32)
                      + (w1.size + w2.size + w_head.size) * 2     # bf16 weights
                      + (b1.size + b2.size + b_head.size + lo.size + hi.size) * 4
                      + b_pad * head_pad * 4)                     # output slab
    cost = pl.CostEstimate(flops=int(flops), transcendentals=0,
                           bytes_accessed=int(bytes_accessed))

    out = pl.pallas_call(
        _actor_kernel,
        grid=(steps,),
        in_specs=in_specs,
        out_specs=out_specs,
        out_shape=out_shape,
        compiler_params=pltpu.CompilerParams(
            dimension_semantics=("parallel",)),
        cost_estimate=cost,
    )(state, w1, b1, w2, b2, w_head, b_head, lo, hi)

    if return_padded_slab:
        return out, action_dim

    mean = out[:B, :action_dim]
    log_std = out[:B, action_dim:two_a]
    return mean, log_std


def init_actor_params(key, state_dim, action_dim, hidden_dim):
    """Deterministic synthetic init (PyTorch-like uniform bound 1/sqrt(fan_in)).

    Weights are stored as (in_features, out_features) so the kernel does x @ W.
    Biases are stored as (1, out_features) for TPU-friendly 2D broadcasting.
    """
    def linear(k, fan_in, fan_out):
        kw, kb = jax.random.split(k)
        bound = 1.0 / jnp.sqrt(fan_in)
        w = jax.random.uniform(kw, (fan_in, fan_out), jnp.float32, -bound, bound)
        b = jax.random.uniform(kb, (1, fan_out), jnp.float32, -bound, bound)
        return w, b

    k1, k2, k3, k4 = jax.random.split(key, 4)
    w1, b1 = linear(k1, state_dim, hidden_dim)
    w2, b2 = linear(k2, hidden_dim, hidden_dim)
    wm, bm = linear(k3, hidden_dim, action_dim)
    ws, bs = linear(k4, hidden_dim, action_dim)
    return dict(w1=w1, b1=b1, w2=w2, b2=b2, wm=wm, bm=bm, ws=ws, bs=bs)


def actor_forward_ref(state, params):
    """Pure-JAX f32 reference of the same forward pass (for verification)."""
    h = jnp.maximum(state @ params["w1"] + params["b1"], 0.0)
    h = jnp.maximum(h @ params["w2"] + params["b2"], 0.0)
    mean = h @ params["wm"] + params["bm"]
    log_std = jnp.clip(h @ params["ws"] + params["bs"], LOG_STD_MIN, LOG_STD_MAX)
    return mean, log_std


if __name__ == "__main__":
    # Small shapes consistent with the module (hidden_dim matches the PyTorch default
    # of 256, which is also lane-dense). B=64 -> single grid step (one big MXU M tile).
    B, STATE_DIM, ACTION_DIM, HIDDEN_DIM = 64, 16, 8, 256

    key = jax.random.PRNGKey(0)
    k_state, k_params = jax.random.split(key)
    state = jax.random.normal(k_state, (B, STATE_DIM), dtype=jnp.float32)
    params = init_actor_params(k_params, STATE_DIM, ACTION_DIM, HIDDEN_DIM)

    mean, log_std = actor_forward(state, params)
    jax.block_until_ready((mean, log_std))

    # Verify against the pure-JAX f32 reference. Tolerances are loosened because the
    # kernel runs its matmuls with bf16 inputs (f32 accumulation).
    mean_ref, log_std_ref = actor_forward_ref(state, params)
    assert mean.shape == (B, ACTION_DIM) and log_std.shape == (B, ACTION_DIM)
    assert jnp.allclose(mean, mean_ref, atol=3e-2, rtol=3e-2), \
        float(jnp.max(jnp.abs(mean - mean_ref)))
    assert jnp.allclose(log_std, log_std_ref, atol=3e-2, rtol=3e-2), \
        float(jnp.max(jnp.abs(log_std - log_std_ref)))
    # Clamp runs in f32 inside the kernel, so the bounds are exact.
    assert float(log_std.max()) <= LOG_STD_MAX and float(log_std.min()) >= LOG_STD_MIN

    # Exercise the tiled / padded path too (odd batch, > MAX_BATCH_TILE).
    B2 = 4100
    state2 = jax.random.normal(jax.random.PRNGKey(1), (B2, STATE_DIM), jnp.float32)
    mean2, log_std2 = actor_forward(state2, params)
    jax.block_until_ready((mean2, log_std2))
    mean2_ref, log_std2_ref = actor_forward_ref(state2, params)
    assert mean2.shape == (B2, ACTION_DIM) and log_std2.shape == (B2, ACTION_DIM)
    assert jnp.allclose(mean2, mean2_ref, atol=3e-2, rtol=3e-2)
    assert jnp.allclose(log_std2, log_std2_ref, atol=3e-2, rtol=3e-2)

    # TODO(synk): Actor.sample (rsample + tanh squash + log_prob) is stochastic
    # host-side logic and is not part of forward(); not implemented in-kernel.

    print("KERNEL_OK")
</pallas_src>

<mosaic_0001>
module attributes {stable_mosaic.version = 11 : i64} {
  func.func @_actor_kernel(%arg0: i32, %arg1: memref<64x16xf32, #tpu.memory_space<vmem>>, %arg2: memref<16x256xbf16, #tpu.memory_space<vmem>>, %arg3: memref<1x256xf32, #tpu.memory_space<vmem>>, %arg4: memref<256x256xbf16, #tpu.memory_space<vmem>>, %arg5: memref<1x256xf32, #tpu.memory_space<vmem>>, %arg6: memref<256x128xbf16, #tpu.memory_space<vmem>>, %arg7: memref<1x128xf32, #tpu.memory_space<vmem>>, %arg8: memref<1x128xf32, #tpu.memory_space<vmem>>, %arg9: memref<1x128xf32, #tpu.memory_space<vmem>>, %arg10: memref<64x128xf32, #tpu.memory_space<vmem>>) attributes {dimension_semantics = [#tpu.dimension_semantics<parallel>], iteration_bounds = array<i64: 1>, scalar_prefetch = 0 : i64, scratch_operands = 0 : i64, tpu.core_type = #tpu.core_type<tc>, window_params = [{transform_indices = @transform_0, window_bounds = array<i64: 64, 16>}, {pipeline_mode = #tpu.pipeline_mode<synchronous>, transform_indices = @transform_1, window_bounds = array<i64: 16, 256>}, {pipeline_mode = #tpu.pipeline_mode<synchronous>, transform_indices = @transform_2, window_bounds = array<i64: 1, 256>}, {pipeline_mode = #tpu.pipeline_mode<synchronous>, transform_indices = @transform_3, window_bounds = array<i64: 256, 256>}, {pipeline_mode = #tpu.pipeline_mode<synchronous>, transform_indices = @transform_4, window_bounds = array<i64: 1, 256>}, {pipeline_mode = #tpu.pipeline_mode<synchronous>, transform_indices = @transform_5, window_bounds = array<i64: 256, 128>}, {pipeline_mode = #tpu.pipeline_mode<synchronous>, transform_indices = @transform_6, window_bounds = array<i64: 1, 128>}, {pipeline_mode = #tpu.pipeline_mode<synchronous>, transform_indices = @transform_7, window_bounds = array<i64: 1, 128>}, {pipeline_mode = #tpu.pipeline_mode<synchronous>, transform_indices = @transform_8, window_bounds = array<i64: 1, 128>}, {transform_indices = @transform_9, window_bounds = array<i64: 64, 128>}]} {
    %c0 = arith.constant 0 : index
    %c0_0 = arith.constant 0 : index
    %0 = vector.load %arg1[%c0, %c0_0] : memref<64x16xf32, #tpu.memory_space<vmem>>, vector<64x16xf32>
    %1 = arith.truncf %0 : vector<64x16xf32> to vector<64x16xbf16>
    %c0_1 = arith.constant 0 : index
    %c0_2 = arith.constant 0 : index
    %2 = vector.load %arg2[%c0_1, %c0_2] : memref<16x256xbf16, #tpu.memory_space<vmem>>, vector<16x256xbf16>
    %cst = arith.constant dense<0.000000e+00> : vector<64x256xf32>
    %3 = tpu.matmul %1, %2, %cst {dimension_numbers = #tpu.dot_dimension_numbers<[1], [0], [0], [1], [0, 0, 1, 1], [], []>} : vector<64x16xbf16>, vector<16x256xbf16>, vector<64x256xf32> -> vector<64x256xf32>
    %c0_3 = arith.constant 0 : index
    %c0_4 = arith.constant 0 : index
    %4 = vector.load %arg3[%c0_3, %c0_4] : memref<1x256xf32, #tpu.memory_space<vmem>>, vector<1x256xf32>
    %5 = vector.broadcast %4 : vector<1x256xf32> to vector<64x256xf32>
    %6 = arith.addf %3, %5 : vector<64x256xf32>
    %cst_5 = arith.constant 0.000000e+00 : f32
    %7 = vector.broadcast %cst_5 : f32 to vector<64x256xf32>
    %8 = arith.maximumf %6, %7 : vector<64x256xf32>
    %9 = arith.truncf %8 : vector<64x256xf32> to vector<64x256xbf16>
    %c0_6 = arith.constant 0 : index
    %c0_7 = arith.constant 0 : index
    %10 = vector.load %arg4[%c0_6, %c0_7] : memref<256x256xbf16, #tpu.memory_space<vmem>>, vector<256x256xbf16>
    %cst_8 = arith.constant dense<0.000000e+00> : vector<64x256xf32>
    %11 = tpu.matmul %9, %10, %cst_8 {dimension_numbers = #tpu.dot_dimension_numbers<[1], [0], [0], [1], [0, 0, 1, 1], [], []>} : vector<64x256xbf16>, vector<256x256xbf16>, vector<64x256xf32> -> vector<64x256xf32>
    %c0_9 = arith.constant 0 : index
    %c0_10 = arith.constant 0 : index
    %12 = vector.load %arg5[%c0_9, %c0_10] : memref<1x256xf32, #tpu.memory_space<vmem>>, vector<1x256xf32>
    %13 = vector.broadcast %12 : vector<1x256xf32> to vector<64x256xf32>
    %14 = arith.addf %11, %13 : vector<64x256xf32>
    %cst_11 = arith.constant 0.000000e+00 : f32
    %15 = vector.broadcast %cst_11 : f32 to vector<64x256xf32>
    %16 = arith.maximumf %14, %15 : vector<64x256xf32>
    %17 = arith.truncf %16 : vector<64x256xf32> to vector<64x256xbf16>
    %c0_12 = arith.constant 0 : index
    %c0_13 = arith.constant 0 : index
    %18 = vector.load %arg6[%c0_12, %c0_13] : memref<256x128xbf16, #tpu.memory_space<vmem>>, vector<256x128xbf16>
    %cst_14 = arith.constant dense<0.000000e+00> : vector<64x128xf32>
    %19 = tpu.matmul %17, %18, %cst_14 {dimension_numbers = #tpu.dot_dimension_numbers<[1], [0], [0], [1], [0, 0, 1, 1], [], []>} : vector<64x256xbf16>, vector<256x128xbf16>, vector<64x128xf32> -> vector<64x128xf32>
    %c0_15 = arith.constant 0 : index
    %c0_16 = arith.constant 0 : index
    %20 = vector.load %arg7[%c0_15, %c0_16] : memref<1x128xf32, #tpu.memory_space<vmem>>, vector<1x128xf32>
    %21 = vector.broadcast %20 : vector<1x128xf32> to vector<64x128xf32>
    %22 = arith.addf %19, %21 : vector<64x128xf32>
    %c0_17 = arith.constant 0 : index
    %c0_18 = arith.constant 0 : index
    %23 = vector.load %arg8[%c0_17, %c0_18] : memref<1x128xf32, #tpu.memory_space<vmem>>, vector<1x128xf32>
    %24 = vector.broadcast %23 : vector<1x128xf32> to vector<64x128xf32>
    %25 = arith.maximumf %22, %24 : vector<64x128xf32>
    %c0_19 = arith.constant 0 : index
    %c0_20 = arith.constant 0 : index
    %26 = vector.load %arg9[%c0_19, %c0_20] : memref<1x128xf32, #tpu.memory_space<vmem>>, vector<1x128xf32>
    %27 = vector.broadcast %26 : vector<1x128xf32> to vector<64x128xf32>
    %28 = arith.minimumf %25, %27 : vector<64x128xf32>
    %c0_21 = arith.constant 0 : index
    %c0_22 = arith.constant 0 : index
    %29 = vector.load %arg10[%c0_21, %c0_22] : memref<64x128xf32, #tpu.memory_space<vmem>>, vector<64x128xf32>
    tpu.vector_store %arg10[%c0_21, %c0_22], %28 {strides = array<i32>} : memref<64x128xf32, #tpu.memory_space<vmem>>, vector<64x128xf32>,
    return
  }
  func.func @transform_0(%arg0: i32) -> (i32, i32) {
    %c0_i32 = arith.constant 0 : i32
    %c0_i32_0 = arith.constant 0 : i32
    return %arg0, %c0_i32 : i32, i32
  }
  func.func @transform_1(%arg0: i32) -> (i32, i32) {
    %c0_i32 = arith.constant 0 : i32
    %c0_i32_0 = arith.constant 0 : i32
    %c0_i32_1 = arith.constant 0 : i32
    return %c0_i32, %c0_i32_0 : i32, i32
  }
  func.func @transform_2(%arg0: i32) -> (i32, i32) {
    %c0_i32 = arith.constant 0 : i32
    %c0_i32_0 = arith.constant 0 : i32
    %c0_i32_1 = arith.constant 0 : i32
    return %c0_i32, %c0_i32_0 : i32, i32
  }
  func.func @transform_3(%arg0: i32) -> (i32, i32) {
    %c0_i32 = arith.constant 0 : i32
    %c0_i32_0 = arith.constant 0 : i32
    %c0_i32_1 = arith.constant 0 : i32
    return %c0_i32, %c0_i32_0 : i32, i32
  }
  func.func @transform_4(%arg0: i32) -> (i32, i32) {
    %c0_i32 = arith.constant 0 : i32
    %c0_i32_0 = arith.constant 0 : i32
    %c0_i32_1 = arith.constant 0 : i32
    return %c0_i32, %c0_i32_0 : i32, i32
  }
  func.func @transform_5(%arg0: i32) -> (i32, i32) {
    %c0_i32 = arith.constant 0 : i32
    %c0_i32_0 = arith.constant 0 : i32
    %c0_i32_1 = arith.constant 0 : i32
    return %c0_i32, %c0_i32_0 : i32, i32
  }
  func.func @transform_6(%arg0: i32) -> (i32, i32) {
    %c0_i32 = arith.constant 0 : i32
    %c0_i32_0 = arith.constant 0 : i32
    %c0_i32_1 = arith.constant 0 : i32
    return %c0_i32, %c0_i32_0 : i32, i32
  }
  func.func @transform_7(%arg0: i32) -> (i32, i32) {
    %c0_i32 = arith.constant 0 : i32
    %c0_i32_0 = arith.constant 0 : i32
    %c0_i32_1 = arith.constant 0 : i32
    return %c0_i32, %c0_i32_0 : i32, i32
  }
  func.func @transform_8(%arg0: i32) -> (i32, i32) {
    %c0_i32 = arith.constant 0 : i32
    %c0_i32_0 = arith.constant 0 : i32
    %c0_i32_1 = arith.constant 0 : i32
    return %c0_i32, %c0_i32_0 : i32, i32
  }
  func.func @transform_9(%arg0: i32) -> (i32, i32) {
    %c0_i32 = arith.constant 0 : i32
    %c0_i32_0 = arith.constant 0 : i32
    return %arg0, %c0_i32 : i32, i32
  }
}

</mosaic_0001>

<bundles_post_ra>
// kernel: tpu_custom_call.1
= control target key start
LH: loop header
LB: loop body
LE: loop exit
PB: predicated region body
PF: predicated region fallthrough
CT: control target
= control target key end

     0   :  { %14 = vsyncpa [#allocation3], 0  ;;  %s1137_s0 = inlined_call_operand.vmem [shape: f32[64,16], index: 0, kind: input, shape index: {}]   ;;  %s1138_s1 = inlined_call_operand.vmem [shape: bf16[16,256], index: 1, kind: input, shape index: {}]   ;;  %s1139_s2 = inlined_call_operand.vmem [shape: f32[1,256], index: 2, kind: input, shape index: {}]   ;;  %s1140_s3 = inlined_call_operand.hbm [shape: bf16[256,256], index: 3, kind: input, shape index: {}]   ;;  %s1141_s4 = inlined_call_operand.vmem [shape: f32[1,256], index: 4, kind: input, shape index: {}]   ;;  %s1142_s5 = inlined_call_operand.hbm [shape: bf16[256,128], index: 5, kind: input, shape index: {}]   ;;  %s1143_s6 = inlined_call_operand.vmem [shape: f32[1,128], index: 6, kind: input, shape index: {}]   ;;  %s1144_s7 = inlined_call_operand.vmem [shape: f32[1,128], index: 7, kind: input, shape index: {}]   ;;  %s1145_s8 = inlined_call_operand.vmem [shape: f32[1,128], index: 8, kind: input, shape index: {}]   ;;  %s1146_s9 = inlined_call_operand.hbm [shape: f32[64,128], index: 9, kind: output, shape index: {}]  }
   0x1   :  { %15 = vsyncpa [#allocation6], 0 }
   0x2   :  { %16 = vsyncpa [#allocation4], 0  ;;  %s1003_s30 = smov [#allocation2]  }
   0x3   :  { %s28_s10 = sshll.u32 %s1003_s30, 4  ;;  %s29_s10 = int_to_ptr.vmem [resolvable:$true] %s28_s10 }
   0x4   :  { %s945_s11 = scalar_lea.vmem %s29_s10, 4096  ;;  %p950_p1 = scmp.lt.s32.totalorder %s29_s10, %s29_s10 }
   0x5   :  { %p946_p0 = scmp.ne.s32.totalorder %s29_s10, %s945_s11  ;;  %p951_p2 = scmp.lt.s32.totalorder %s945_s11, %s945_s11 }
   0x7   :  { %p952_p3 = por %p951_p2, %p950_p1 }
   0x9   :  { %p953_p4 = pnand %p952_p3, %p946_p0 }
   0xb   :  { %956 = shalt.err (!%p953_p4)
}
   0xc   :  { %s1004_s12 = smov 128   ;;  %s1005_s13 = smov 8  }
   0xd   :  { %34 = dma.hbm_to_vmem [thread:$0]  %s1140_s3, 4096, %s29_s10, [#allocation3], %s1004_s12, %s1004_s12, %s1005_s13  }
   0xe   :  { %s1006_s16 = smov [#allocation5]  }
   0xf   :  { %s42_s17 = sshll.u32 %s1006_s16, 4  ;;  %s43_s17 = int_to_ptr.vmem [resolvable:$true] %s42_s17 }
  0x10   :  { %s965_s18 = scalar_lea.vmem %s43_s17, 2048  ;;  %p970_p6 = scmp.lt.s32.totalorder %s43_s17, %s43_s17 }
  0x11   :  { %p966_p5 = scmp.ne.s32.totalorder %s43_s17, %s965_s18  ;;  %p971_p7 = scmp.lt.s32.totalorder %s965_s18, %s965_s18 }
  0x13   :  { %p972_p8 = por %p971_p7, %p970_p6 }
  0x15   :  { %p973_p9 = pnand %p972_p8, %p966_p5 }
  0x17   :  { %976 = shalt.err (!%p973_p9)
}
  0x18   :  { %s1007_s19 = smov 64   ;;  %s1008_s20 = smov 4  }
  0x19   :  { %48 = dma.hbm_to_vmem [thread:$0]  %s1142_s5, 2048, %s43_s17, [#allocation6], %s1007_s19, %s1007_s19, %s1008_s20  }
  0x1a   :  { %997 = dma.done.wait [#allocation3], 4096  }
  0x1b   :  { %998 = vsyncadd [#allocation3], 4294963200 }
  0x1c   :  { %999 = dma.done.wait [#allocation6], 2048  }
  0x1d   :  { %1000 = vsyncadd [#allocation6], 4294965248  ;;  %v1009_v0 = vmov 0   ;;  %v870_v1 = vld [vmem:[%s1138_s1 + $0x4] ss:$8 sps:$4 sm:$0xff]   ;;  %vm98_vm0 = vcmask 130048   ;;  %v78_v57 = vlaneseq }
  0x1e   :  { %143 = vmatprep.mubr.bf16.mxu0 %v1009_v0  ;;  %v872_v2 = vld [vmem:[%s1138_s1] ss:$8 sps:$4 sm:$0xff]   ;;  %125 = vmatprep.subr.bf16.mxu0 %v870_v1  ;;  %v873_v6 = vld [vmem:[#allocation2 + $0x74] ss:$8 sps:$4 sm:$0xff]   ;;  %v875_v7 = vld [vmem:[#allocation2 + $0x70] ss:$8 sps:$4 sm:$0xff]  }
  0x1f   :  { %v62_v3 = vld [vmem:[%s1137_s0] sm:$0xff]  ;;  %v63_v4 = vld [vmem:[%s1137_s0 + $0x8] sm:$0xff]  ;;  %126 = vmatpush1.bf16.msra.mxu0 %v872_v2  ;;  %v64_v8 = vld [vmem:[%s1137_s0 + $0x10] sm:$0xff]  ;;  %412 = vmatprep.subr.bf16.mxu1 %v873_v6  ;;  %v1104_v58 = vshrl.u32 %v78_v57, 7 }
  0x20   :  { %v70_v5 = vpack.c.bf16 %v63_v4, %v62_v3  ;;  %v876_v9 = vld [vmem:[#allocation2 + $0x64] ss:$8 sps:$4 sm:$0xff]   ;;  %v65_v10 = vld [vmem:[%s1137_s0 + $0x18] sm:$0xff]  ;;  %413 = vmatpush1.bf16.msra.mxu1 %v875_v7  ;;  %v878_v11 = vld [vmem:[#allocation2 + $0x60] ss:$8 sps:$4 sm:$0xff]  }
  0x21   :  { %414 = vmatprep.subr.bf16.mxu1 %v876_v9  ;;  %v879_v12 = vld [vmem:[#allocation2 + $0x54] ss:$8 sps:$4 sm:$0xff]   ;;  %v71_v13 = vpack.c.bf16 %v65_v10, %v64_v8  ;;  %v881_v14 = vld [vmem:[#allocation2 + $0x50] ss:$8 sps:$4 sm:$0xff]   ;;  %v882_v15 = vld [vmem:[#allocation2 + $0x44] ss:$8 sps:$4 sm:$0xff]  }
  0x22   :  { %767 = vmatmul.mubr.msk.bf16.vlgmr.msra.gmra.mxu0 %vm98_vm0, %v70_v5  ;;  %v66_v16 = vld [vmem:[%s1137_s0 + $0x20] sm:$0xff]  ;;  %v67_v17 = vld [vmem:[%s1137_s0 + $0x28] sm:$0xff]  ;;  %v885_v19 = vld [vmem:[#allocation2 + $0x34] ss:$8 sps:$4 sm:$0xff]   ;;  %v84_v59 = vsub.s32 1, %v1104_v58  ;;  %v80_v60 = vsub.s32 0, %v1104_v58 }
  0x23   :  { %153 = vmatprep.mubr.bf16.mxu0 %v1009_v0  ;;  %v884_v18 = vld [vmem:[#allocation2 + $0x40] ss:$8 sps:$4 sm:$0xff]   ;;  %v72_v20 = vpack.c.bf16 %v67_v17, %v66_v16  ;;  %v887_v21 = vld [vmem:[#allocation2 + $0x30] ss:$8 sps:$4 sm:$0xff]   ;;  %v888_v22 = vld [vmem:[#allocation2 + $0x24] ss:$8 sps:$4 sm:$0xff]  }
  0x24   :  { %415 = vmatpush1.bf16.msra.mxu1 %v878_v11  ;;  %v68_v23 = vld [vmem:[%s1137_s0 + $0x30] sm:$0xff]  ;;  %v69_v24 = vld [vmem:[%s1137_s0 + $0x38] sm:$0xff]  ;;  %v890_v25 = vld [vmem:[#allocation2 + $0x20] ss:$8 sps:$4 sm:$0xff]  }
  0x25   :  { %416 = vmatprep.subr.bf16.mxu1 %v879_v12  ;;  %v891_v26 = vld [vmem:[#allocation2 + $0x14] ss:$8 sps:$4 sm:$0xff]   ;;  %v893_v27 = vld [vmem:[#allocation2 + $0x10] ss:$8 sps:$4 sm:$0xff]   ;;  %v73_v28 = vpack.c.bf16 %v69_v24, %v68_v23  ;;  %v894_v29 = vld [vmem:[#allocation2 + $0x4] ss:$8 sps:$4 sm:$0xff]  }
  0x26   :  { %v896_v30 = vld [vmem:[#allocation2] ss:$8 sps:$4 sm:$0xff]   ;;  %v897_v31 = vld [vmem:[#allocation2 + $0xf4] ss:$8 sps:$4 sm:$0xff]   ;;  %v899_v32 = vld [vmem:[#allocation2 + $0xf0] ss:$8 sps:$4 sm:$0xff]  }
  0x27   :  { %v900_v33 = vld [vmem:[#allocation2 + $0xe4] ss:$8 sps:$4 sm:$0xff]   ;;  %v902_v34 = vld [vmem:[#allocation2 + $0xe0] ss:$8 sps:$4 sm:$0xff]   ;;  %v903_v35 = vld [vmem:[#allocation2 + $0xd4] ss:$8 sps:$4 sm:$0xff]  }
  0x28   :  { %417 = vmatpush1.bf16.msra.mxu1 %v881_v14  ;;  %v905_v36 = vld [vmem:[#allocation2 + $0xd0] ss:$8 sps:$4 sm:$0xff]   ;;  %v906_v37 = vld [vmem:[#allocation2 + $0xc4] ss:$8 sps:$4 sm:$0xff]   ;;  %v908_v38 = vld [vmem:[#allocation2 + $0xc0] ss:$8 sps:$4 sm:$0xff]  }
  0x29   :  { %418 = vmatprep.subr.bf16.mxu1 %v882_v15  ;;  %v909_v39 = vld [vmem:[#allocation2 + $0xb4] ss:$8 sps:$4 sm:$0xff]   ;;  %v911_v40 = vld [vmem:[#allocation2 + $0xb0] ss:$8 sps:$4 sm:$0xff]   ;;  %v912_v41 = vld [vmem:[#allocation2 + $0xa4] ss:$8 sps:$4 sm:$0xff]  }
  0x2a   :  { %768 = vmatmul.mubr.msk.bf16.gmra.mxu0 %vm98_vm0, %v71_v13  ;;  %v914_v42 = vld [vmem:[#allocation2 + $0xa0] ss:$8 sps:$4 sm:$0xff]   ;;  %v915_v43 = vld [vmem:[#allocation2 + $0x94] ss:$8 sps:$4 sm:$0xff]   ;;  %v917_v44 = vld [vmem:[#allocation2 + $0x90] ss:$8 sps:$4 sm:$0xff]  }
  0x2b   :  { %163 = vmatprep.mubr.bf16.mxu0 %v1009_v0  ;;  %v918_v45 = vld [vmem:[#allocation2 + $0x84] ss:$8 sps:$4 sm:$0xff]   ;;  %v920_v46 = vld [vmem:[#allocation2 + $0x80] ss:$8 sps:$4 sm:$0xff]   ;;  %v921_v47 = vld [vmem:[#allocation5 + $0x78] sm:$0xff]  }
  0x2c   :  { %419 = vmatpush1.bf16.msra.mxu1 %v884_v18  ;;  %v922_v48 = vld [vmem:[#allocation5 + $0x38] sm:$0xff]   ;;  %v923_v49 = vld [vmem:[#allocation5 + $0x70] sm:$0xff]   ;;  %822 = vmatprep.subr.bf16.mxu0 %v921_v47  ;;  %v925_v51 = vld [vmem:[#allocation5 + $0x68] sm:$0xff]  }
  0x2d   :  { %420 = vmatprep.subr.bf16.mxu1 %v885_v19  ;;  %823 = vmatpush3.bf16.msra.mxu0 %v922_v48  ;;  %v924_v50 = vld [vmem:[#allocation5 + $0x30] sm:$0xff]   ;;  %v926_v52 = vld [vmem:[#allocation5 + $0x28] sm:$0xff]   ;;  %v927_v53 = vld [vmem:[#allocation5 + $0x60] sm:$0xff]  }
  0x2e   :  { %824 = vmatprep.subr.bf16.mxu0 %v923_v49  ;;  %v928_v54 = vld [vmem:[#allocation5 + $0x20] sm:$0xff]   ;;  %v929_v55 = vld [vmem:[#allocation5 + $0x58] sm:$0xff]   ;;  %v932_v57 = vld [vmem:[#allocation5 + $0x10] sm:$0xff]  }
  0x2f   :  { %v930_v56 = vld [vmem:[#allocation5 + $0x18] sm:$0xff]   ;;  %v76_v61 = vld [vmem:[%s1139_s2] sm:$0x3] }
  0x30   :  { %421 = vmatpush1.bf16.msra.mxu1 %v887_v21  ;;  %v85_v63 = vrot.slane %v76_v61, %v84_v59 }
  0x31   :  { %422 = vmatprep.subr.bf16.mxu1 %v888_v22  ;;  %825 = vmatpush3.bf16.msra.mxu0 %v924_v50 }
  0x32   :  { %769 = vmatmul.mubr.msk.bf16.gmra.mxu0 %vm98_vm0, %v72_v20  ;;  %826 = vmatprep.subr.bf16.mxu0 %v925_v51 }
  0x33   :  { %173 = vmatprep.mubr.bf16.mxu0 %v1009_v0  ;;  %v81_v0 = vrot.slane %v76_v61, %v80_v60  ;;  %v933_v61 = vld [vmem:[#allocation5 + $0x48] sm:$0xff]  }
  0x34   :  { %423 = vmatpush1.bf16.msra.mxu1 %v890_v25 }
  0x35   :  { %424 = vmatprep.subr.bf16.mxu1 %v891_v26  ;;  %827 = vmatpush3.bf16.msra.mxu0 %v926_v52 }
  0x36   :  { %828 = vmatprep.subr.bf16.mxu0 %v927_v53 }
  0x38   :  { %425 = vmatpush1.bf16.msra.mxu1 %v893_v27 }
  0x39   :  { %426 = vmatprep.subr.bf16.mxu1 %v894_v29  ;;  %829 = vmatpush3.bf16.msra.mxu0 %v928_v54 }
  0x3a   :  { %770 = vmatmul.mubr.msk.bf16.gmra.mxu0 %vm98_vm0, %v73_v28  ;;  %830 = vmatprep.subr.bf16.mxu0 %v929_v55 }
  0x3c   :  { %427 = vmatpush1.bf16.msra.mxu1 %v896_v30 }
  0x3d   :  { %428 = vmatprep.subr.bf16.mxu1 %v897_v31  ;;  %831 = vmatpush3.bf16.msra.mxu0 %v930_v56  ;;  %v931_v56 = vld [vmem:[#allocation5 + $0x50] sm:$0xff]  }
  0x3e   :  { %832 = vmatprep.subr.bf16.mxu0 %v931_v56 }
  0x40   :  { %429 = vmatpush2.bf16.msra.mxu1 %v899_v32 }
  0x41   :  { %430 = vmatprep.subr.bf16.mxu1 %v900_v33  ;;  %833 = vmatpush3.bf16.msra.mxu0 %v932_v57 }
  0x42   :  { %834 = vmatprep.subr.bf16.mxu0 %v933_v61  ;;  %v803_v61 = vld [vmem:[%s1143_s6] ss:$0 sm:$0xff]  ;;  %s1010_s6 = smov [#allocation7]  }
  0x44   :  { %431 = vmatpush2.bf16.msra.mxu1 %v902_v34 }
  0x45   :  { %432 = vmatprep.subr.bf16.mxu1 %v903_v35 }
  0x48   :  { %433 = vmatpush2.bf16.msra.mxu1 %v905_v36 }
  0x49   :  { %434 = vmatprep.subr.bf16.mxu1 %v906_v37 }
  0x4c   :  { %435 = vmatpush2.bf16.msra.mxu1 %v908_v38 }
  0x4d   :  { %436 = vmatprep.subr.bf16.mxu1 %v909_v39 }
  0x50   :  { %437 = vmatpush2.bf16.msra.mxu1 %v911_v40 }
  0x51   :  { %438 = vmatprep.subr.bf16.mxu1 %v912_v41 }
  0x54   :  { %439 = vmatpush2.bf16.msra.mxu1 %v914_v42 }
  0x55   :  { %440 = vmatprep.subr.bf16.mxu1 %v915_v43 }
  0x58   :  { %441 = vmatpush2.bf16.msra.mxu1 %v917_v44 }
  0x59   :  { %442 = vmatprep.subr.bf16.mxu1 %v918_v45 }
  0x5c   :  { %443 = vmatpush2.bf16.msra.mxu1 %v920_v46 }
  0xe2   :  { %v145_v62 = vpop.f32.mrf.mxu0 }
  0xe3   :  { %v146_v5 = vadd.f32 %v145_v62, %v81_v0  ;;  %v934_v62 = vld [vmem:[#allocation5 + $0x8] sm:$0xff]  }
  0xe4   :  { %v147_v1 = vpop.f32.mrf.mxu0  ;;  %835 = vmatpush3.bf16.msra.mxu0 %v934_v62 }
  0xe5   :  { %v148_v3 = vadd.f32 %v147_v1, %v85_v63  ;;  %v184_v12 = vmax.f32 %v146_v5, 0.0  ;;  %v936_v1 = vld [vmem:[#allocation5] sm:$0xff]  }
  0xe6   :  { %v149_v2 = vpop.f32.mrf.mxu0 }
  0xe7   :  { %v150_v4 = vadd.f32 %v149_v2, %v81_v0  ;;  %v185_v10 = vmax.f32 %v148_v3, 0.0 }
  0xe8   :  { %v151_v6 = vpop.f32.mrf.mxu0 }
  0xe9   :  { %v152_v7 = vadd.f32 %v151_v6, %v85_v63  ;;  %v186_v8 = vmax.f32 %v150_v4, 0.0 }
  0xea   :  { %v155_v9 = vpop.f32.mrf.mxu0 }
  0xeb   :  { %v187_v11 = vmax.f32 %v152_v7, 0.0  ;;  %v200_v15 = vpack.c.bf16 %v186_v8, %v184_v12  ;;  %v156_v19 = vadd.f32 %v155_v9, %v81_v0 }
  0xec   :  { %v157_v13 = vpop.f32.mrf.mxu0 }
  0xed   :  { %v201_v14 = vpack.c.bf16 %v187_v11, %v185_v10  ;;  %v158_v17 = vadd.f32 %v157_v13, %v85_v63  ;;  %v188_v26 = vmax.f32 %v156_v19, 0.0 }
  0xee   :  { %v159_v16 = vpop.f32.mrf.mxu0 }
  0xef   :  { %v160_v18 = vadd.f32 %v159_v16, %v81_v0  ;;  %444 = vmatprep.mubr.bf16.mxu1 %v201_v14  ;;  %v189_v24 = vmax.f32 %v158_v17, 0.0 }
  0xf0   :  { %v161_v20 = vpop.f32.mrf.mxu0  ;;  %445 = vmatmul.mubr.bf16.vlgmr.msra.gmra.mxu1 %v200_v15 }
  0xf1   :  { %v162_v21 = vadd.f32 %v161_v20, %v85_v63  ;;  %v190_v22 = vmax.f32 %v160_v18, 0.0 }
  0xf2   :  { %v165_v23 = vpop.f32.mrf.mxu0 }
  0xf3   :  { %v191_v25 = vmax.f32 %v162_v21, 0.0  ;;  %v202_v29 = vpack.c.bf16 %v190_v22, %v188_v26  ;;  %v166_v33 = vadd.f32 %v165_v23, %v81_v0 }
  0xf4   :  { %v167_v27 = vpop.f32.mrf.mxu0 }
  0xf5   :  { %v203_v28 = vpack.c.bf16 %v191_v25, %v189_v24  ;;  %v168_v31 = vadd.f32 %v167_v27, %v85_v63  ;;  %v192_v40 = vmax.f32 %v166_v33, 0.0 }
  0xf6   :  { %v169_v30 = vpop.f32.mrf.mxu0 }
  0xf7   :  { %v170_v32 = vadd.f32 %v169_v30, %v81_v0  ;;  %454 = vmatprep.mubr.bf16.mxu1 %v203_v28  ;;  %v193_v38 = vmax.f32 %v168_v31, 0.0 }
  0xf8   :  { %v171_v34 = vpop.f32.mrf.mxu0  ;;  %455 = vmatmul.mubr.bf16.gmra.mxu1 %v202_v29 }
  0xf9   :  { %v172_v35 = vadd.f32 %v171_v34, %v85_v63  ;;  %v194_v36 = vmax.f32 %v170_v32, 0.0 }
  0xfa   :  { %v175_v37 = vpop.f32.mrf.mxu0 }
  0xfb   :  { %v195_v39 = vmax.f32 %v172_v35, 0.0  ;;  %v204_v43 = vpack.c.bf16 %v194_v36, %v192_v40  ;;  %v176_v47 = vadd.f32 %v175_v37, %v81_v0 }
  0xfc   :  { %v177_v41 = vpop.f32.mrf.mxu0 }
  0xfd   :  { %v205_v42 = vpack.c.bf16 %v195_v39, %v193_v38  ;;  %v178_v45 = vadd.f32 %v177_v41, %v85_v63  ;;  %v196_v53 = vmax.f32 %v176_v47, 0.0 }
  0xfe   :  { %v179_v44 = vpop.f32.mrf.mxu0 }
  0xff   :  { %v180_v46 = vadd.f32 %v179_v44, %v81_v0  ;;  %464 = vmatprep.mubr.bf16.mxu1 %v205_v42  ;;  %v197_v51 = vmax.f32 %v178_v45, 0.0  ;;  %v935_v0 = vld [vmem:[#allocation5 + $0x40] sm:$0xff]  }
 0x100   :  { %v181_v48 = vpop.f32.mrf.mxu0  ;;  %465 = vmatmul.mubr.bf16.gmra.mxu1 %v204_v43  ;;  %836 = vmatprep.subr.bf16.mxu0 %v935_v0 }
 0x101   :  { %v182_v49 = vadd.f32 %v181_v48, %v85_v63  ;;  %v198_v50 = vmax.f32 %v180_v46, 0.0  ;;  %837 = vmatpush3.bf16.msra.mxu0 %v936_v1  ;;  %v240_v63 = vld [vmem:[%s1141_s4] sm:$0x3] }
 0x102   :  { %v249_v3 = vrot.slane %v240_v63, %v84_v59  ;;  %v245_v4 = vrot.slane %v240_v63, %v80_v60  ;;  %v820_v1 = vld [vmem:[%s1144_s7] ss:$0 sm:$0xff]  ;;  %s752_s7 = sshll.u32 %s1010_s6, 4  ;;  %s753_s7 = int_to_ptr.vmem [resolvable:$true] %s752_s7 }
 0x103   :  { %v199_v52 = vmax.f32 %v182_v49, 0.0  ;;  %v206_v55 = vpack.c.bf16 %v198_v50, %v196_v53  ;;  %p982_p11 = scmp.lt.s32.totalorder %s753_s7, %s753_s7 }
 0x105   :  { %v207_v54 = vpack.c.bf16 %v199_v52, %v197_v51 }
 0x107   :  { %474 = vmatprep.mubr.bf16.mxu1 %v207_v54 }
 0x108   :  { %475 = vmatmul.mubr.bf16.gmra.mxu1 %v206_v55 }
 0x1b0   :  { %v446_v2 = vpop.f32.mrf.mxu1 }
 0x1b1   :  { %v447_v9 = vadd.f32 %v446_v2, %v245_v4 }
 0x1b2   :  { %v448_v5 = vpop.f32.mrf.mxu1 }
 0x1b3   :  { %v449_v7 = vadd.f32 %v448_v5, %v249_v3  ;;  %v485_v16 = vmax.f32 %v447_v9, 0.0 }
 0x1b4   :  { %v450_v6 = vpop.f32.mrf.mxu1 }
 0x1b5   :  { %v451_v8 = vadd.f32 %v450_v6, %v245_v4  ;;  %v486_v14 = vmax.f32 %v449_v7, 0.0 }
 0x1b6   :  { %v452_v10 = vpop.f32.mrf.mxu1 }
 0x1b7   :  { %v453_v11 = vadd.f32 %v452_v10, %v249_v3  ;;  %v487_v12 = vmax.f32 %v451_v8, 0.0 }
 0x1b8   :  { %v456_v13 = vpop.f32.mrf.mxu1 }
 0x1b9   :  { %v488_v15 = vmax.f32 %v453_v11, 0.0  ;;  %v501_v19 = vpack.c.bf16 %v487_v12, %v485_v16  ;;  %v457_v58 = vadd.f32 %v456_v13, %v245_v4 }
 0x1ba   :  { %v458_v17 = vpop.f32.mrf.mxu1 }
 0x1bb   :  { %v502_v18 = vpack.c.bf16 %v488_v15, %v486_v14  ;;  %v459_v59 = vadd.f32 %v458_v17, %v249_v3  ;;  %v489_v27 = vmax.f32 %v457_v58, 0.0 }
 0x1bc   :  { %v460_v20 = vpop.f32.mrf.mxu1 }
 0x1bd   :  { %v461_v21 = vadd.f32 %v460_v20, %v245_v4  ;;  %676 = vmatprep.mubr.bf16.mxu0 %v502_v18  ;;  %v490_v25 = vmax.f32 %v459_v59, 0.0 }
 0x1be   :  { %v462_v60 = vpop.f32.mrf.mxu1  ;;  %677 = vmatmul.mubr.bf16.vlgmr.msra.gmra.mxu0 %v501_v19 }
 0x1bf   :  { %v463_v22 = vadd.f32 %v462_v60, %v249_v3  ;;  %v491_v23 = vmax.f32 %v461_v21, 0.0 }
 0x1c0   :  { %v466_v24 = vpop.f32.mrf.mxu1 }
 0x1c1   :  { %v492_v26 = vmax.f32 %v463_v22, 0.0  ;;  %v503_v30 = vpack.c.bf16 %v491_v23, %v489_v27  ;;  %v467_v34 = vadd.f32 %v466_v24, %v245_v4 }
 0x1c2   :  { %v468_v28 = vpop.f32.mrf.mxu1 }
 0x1c3   :  { %v504_v29 = vpack.c.bf16 %v492_v26, %v490_v25  ;;  %v469_v32 = vadd.f32 %v468_v28, %v249_v3  ;;  %v493_v41 = vmax.f32 %v467_v34, 0.0 }
 0x1c4   :  { %v470_v31 = vpop.f32.mrf.mxu1 }
 0x1c5   :  { %v471_v33 = vadd.f32 %v470_v31, %v245_v4  ;;  %684 = vmatprep.mubr.bf16.mxu0 %v504_v29  ;;  %v494_v39 = vmax.f32 %v469_v32, 0.0 }
 0x1c6   :  { %v472_v35 = vpop.f32.mrf.mxu1  ;;  %685 = vmatmul.mubr.bf16.gmra.mxu0 %v503_v30 }
 0x1c7   :  { %v473_v36 = vadd.f32 %v472_v35, %v249_v3  ;;  %v495_v37 = vmax.f32 %v471_v33, 0.0 }
 0x1c8   :  { %v476_v38 = vpop.f32.mrf.mxu1 }
 0x1c9   :  { %v496_v40 = vmax.f32 %v473_v36, 0.0  ;;  %v505_v44 = vpack.c.bf16 %v495_v37, %v493_v41  ;;  %v477_v48 = vadd.f32 %v476_v38, %v245_v4 }
 0x1ca   :  { %v478_v42 = vpop.f32.mrf.mxu1 }
 0x1cb   :  { %v506_v43 = vpack.c.bf16 %v496_v40, %v494_v39  ;;  %v479_v46 = vadd.f32 %v478_v42, %v249_v3  ;;  %v497_v54 = vmax.f32 %v477_v48, 0.0 }
 0x1cc   :  { %v480_v45 = vpop.f32.mrf.mxu1 }
 0x1cd   :  { %v481_v47 = vadd.f32 %v480_v45, %v245_v4  ;;  %692 = vmatprep.mubr.bf16.mxu0 %v506_v43  ;;  %v498_v52 = vmax.f32 %v479_v46, 0.0 }
 0x1ce   :  { %v482_v49 = vpop.f32.mrf.mxu1  ;;  %693 = vmatmul.mubr.bf16.gmra.mxu0 %v505_v44 }
 0x1cf   :  { %v483_v50 = vadd.f32 %v482_v49, %v249_v3  ;;  %v499_v51 = vmax.f32 %v481_v47, 0.0  ;;  %v821_v3 = vld [vmem:[%s1145_s8] ss:$0 sm:$0xff]  ;;  %s977_s8 = scalar_lea.vmem %s753_s7, 1024 }
 0x1d0   :  { %p978_p10 = scmp.ne.s32.totalorder %s753_s7, %s977_s8  ;;  %p983_p12 = scmp.lt.s32.totalorder %s977_s8, %s977_s8 }
 0x1d1   :  { %v500_v53 = vmax.f32 %v483_v50, 0.0  ;;  %v507_v56 = vpack.c.bf16 %v499_v51, %v497_v54 }
 0x1d2   :  { %p984_p13 = por %p983_p12, %p982_p11 }
 0x1d3   :  { %v508_v55 = vpack.c.bf16 %v500_v53, %v498_v52 }
 0x1d4   :  { %p985_p0 = pnand %p984_p13, %p978_p10 }
 0x1d5   :  { %700 = vmatprep.mubr.bf16.mxu0 %v508_v55 }
 0x1d6   :  { %701 = vmatmul.mubr.bf16.gmra.mxu0 %v507_v56 }
 0x27e   :  { %v838_v57 = vpop.f32.mrf.mxu0 }
 0x280   :  { %v839_v62 = vpop.f32.mrf.mxu0 }
 0x281   :  { %v840_v0 = vadd.f32 %v839_v62, %v838_v57 }
 0x282   :  { %v841_v63 = vpop.f32.mrf.mxu0 }
 0x283   :  { %v679_v2 = vadd.f32 %v840_v0, %v803_v61 }
 0x284   :  { %v842_v4 = vpop.f32.mrf.mxu0 }
 0x285   :  { %v716_v5 = vmax.f32 %v679_v2, %v820_v1  ;;  %v843_v6 = vadd.f32 %v842_v4, %v841_v63 }
 0x286   :  { %v844_v7 = vpop.f32.mrf.mxu0 }
 0x287   :  { %v731_v8 = vmin.f32 %v716_v5, %v821_v3  ;;  %v682_v9 = vadd.f32 %v843_v6, %v803_v61 }
 0x288   :  { %v845_v10 = vpop.f32.mrf.mxu0 }
 0x289   :  { %739 = vst [vmem:[#allocation7] sm:$0xff] %v731_v8  ;;  %v717_v11 = vmax.f32 %v682_v9, %v820_v1  ;;  %v846_v12 = vadd.f32 %v845_v10, %v844_v7 }
 0x28a   :  { %v847_v13 = vpop.f32.mrf.mxu0 }
 0x28b   :  { %v732_v14 = vmin.f32 %v717_v11, %v821_v3  ;;  %v687_v15 = vadd.f32 %v846_v12, %v803_v61 }
 0x28c   :  { %v848_v16 = vpop.f32.mrf.mxu0 }
 0x28d   :  { %740 = vst [vmem:[#allocation7 + $0x8] sm:$0xff] %v732_v14  ;;  %v718_v17 = vmax.f32 %v687_v15, %v820_v1  ;;  %v849_v18 = vadd.f32 %v848_v16, %v847_v13 }
 0x28e   :  { %v850_v19 = vpop.f32.mrf.mxu0 }
 0x28f   :  { %v733_v20 = vmin.f32 %v718_v17, %v821_v3  ;;  %v690_v59 = vadd.f32 %v849_v18, %v803_v61 }
 0x290   :  { %v851_v21 = vpop.f32.mrf.mxu0 }
 0x291   :  { %741 = vst [vmem:[#allocation7 + $0x10] sm:$0xff] %v733_v20  ;;  %v719_v58 = vmax.f32 %v690_v59, %v820_v1  ;;  %v852_v60 = vadd.f32 %v851_v21, %v850_v19 }
 0x292   :  { %v853_v22 = vpop.f32.mrf.mxu0 }
 0x293   :  { %v734_v23 = vmin.f32 %v719_v58, %v821_v3  ;;  %v695_v24 = vadd.f32 %v852_v60, %v803_v61 }
 0x294   :  { %v854_v25 = vpop.f32.mrf.mxu0 }
 0x295   :  { %742 = vst [vmem:[#allocation7 + $0x18] sm:$0xff] %v734_v23  ;;  %v720_v26 = vmax.f32 %v695_v24, %v820_v1  ;;  %v855_v27 = vadd.f32 %v854_v25, %v853_v22 }
 0x296   :  { %v856_v28 = vpop.f32.mrf.mxu0 }
 0x297   :  { %v735_v29 = vmin.f32 %v720_v26, %v821_v3  ;;  %v698_v30 = vadd.f32 %v855_v27, %v803_v61 }
 0x298   :  { %v857_v31 = vpop.f32.mrf.mxu0 }
 0x299   :  { %743 = vst [vmem:[#allocation7 + $0x20] sm:$0xff] %v735_v29  ;;  %v721_v32 = vmax.f32 %v698_v30, %v820_v1  ;;  %v858_v33 = vadd.f32 %v857_v31, %v856_v28 }
 0x29a   :  { %v859_v34 = vpop.f32.mrf.mxu0 }
 0x29b   :  { %v736_v35 = vmin.f32 %v721_v32, %v821_v3  ;;  %v703_v36 = vadd.f32 %v858_v33, %v803_v61 }
 0x29c   :  { %v860_v37 = vpop.f32.mrf.mxu0 }
 0x29d   :  { %744 = vst [vmem:[#allocation7 + $0x28] sm:$0xff] %v736_v35  ;;  %v722_v38 = vmax.f32 %v703_v36, %v820_v1  ;;  %v861_v39 = vadd.f32 %v860_v37, %v859_v34 }
 0x29f   :  { %v737_v40 = vmin.f32 %v722_v38, %v821_v3  ;;  %v706_v41 = vadd.f32 %v861_v39, %v803_v61 }
 0x2a1   :  { %745 = vst [vmem:[#allocation7 + $0x30] sm:$0xff] %v737_v40  ;;  %v723_v42 = vmax.f32 %v706_v41, %v820_v1 }
 0x2a3   :  { %v738_v43 = vmin.f32 %v723_v42, %v821_v3 }
 0x2a5   :  { %746 = vst [vmem:[#allocation7 + $0x38] sm:$0xff] %v738_v43 }
 0x2a6   :  { %988 = shalt.err (!%p985_p0)
}
 0x2a7   :  { %758 = dma.vmem_to_hbm [thread:$0]  %s753_s7, 1024, %s1146_s9, [#allocation4], %s1004_s12, %s1004_s12, %s1005_s13  }
 0x2a8   :  { %1001 = dma.done.wait [#allocation4], 1024  }
 0x2a9   :  { %1002 = vsyncadd [#allocation4], 4294966272 }
 0x2aa   :  { %762 = vsyncpa [#allocation3], 1 }
 0x2ab   :  { %763 = vsyncpa [#allocation6], 1 }
 0x2ac   :  { %764 = vsyncpa [#allocation4], 1 }

</bundles_post_ra>
